<compile_context>
chip_gen: v5e
topology: v5e:2x2
jax: 0.10.0
libtpu: 0.0.40
codegen_flags: <defaults>
</compile_context>

<pallas_src>
import jax
import jax.numpy as jnp
from jax.experimental import pallas as pl
from jax.experimental.pallas import tpu as pltpu


def _round_up(x, m):
    return ((x + m - 1) // m) * m


def softq_kernel(x_ref, w1_ref, b1_ref, w2_ref, b2_ref, w3_ref, b3_ref, o_ref):
    """One batch tile of the SoftQ MLP in batch-on-lanes layout.

    x_ref  : (D, TB)  compute dtype -- concat([state, action], 1)^T tile
    w1     : (H, D)   compute dtype (PyTorch-native (out, in))
    b1, b2 : (H, 1)   float32 (lane-broadcast columns)
    w2     : (H, H)   compute dtype
    w3     : (1, H)   compute dtype (head row)
    b3     : (1, 1)   float32 scalar in SMEM
    o_ref  : (1, TB)  float32 -- q values along lanes (lane-dense store)
    """
    # Layer 1: W1 @ x + b1, f32 accumulation, f32 bias/ReLU (v5e-safe).
    h1 = jnp.dot(w1_ref[...], x_ref[...],
                 preferred_element_type=jnp.float32) + b1_ref[...]
    h1 = jnp.maximum(h1, 0.0)

    # Layer 2: W2 @ h1 + b2.
    h2 = jnp.dot(w2_ref[...], h1.astype(w2_ref.dtype),
                 preferred_element_type=jnp.float32) + b2_ref[...]
    h2 = jnp.maximum(h2, 0.0)

    # Head: (1, H) @ (H, TB) -> (1, TB); no transpose, lane-dense output.
    q = jnp.dot(w3_ref[...], h2.astype(w3_ref.dtype),
                preferred_element_type=jnp.float32)
    o_ref[...] = (q + b3_ref[0, 0]).astype(o_ref.dtype)


def softq_forward(state, action, params, *, block_b=4096,
                  compute_dtype=jnp.bfloat16):
    """Pallas forward of SoftQNetwork.

    params = (w1, b1, w2, b2, w3, b3) in PyTorch shapes:
      w1 (H, D), b1 (H,), w2 (H, H), b2 (H,), w3 (1, H), b3 (1,).
    compute_dtype applies to matmul operands only; accumulation/bias/ReLU and
    the returned q values are float32.
    """
    w1, b1, w2, b2, w3, b3 = params
    B, num_inputs = state.shape
    num_actions = action.shape[1]
    H, D = w1.shape
    assert D == num_inputs + num_actions

    # --- Tile selection -----------------------------------------------------
    # Target >= 2 tiles so v7x's two TensorCores both get work on the
    # "parallel" batch axis (one extra ~0.35us grid step is noise on v5e/v6e),
    # keep TB a multiple of 128 (lane-aligned multi-tile blocks) and close to
    # B / n_tiles to minimize padding, capped at block_b.
    n_tiles = max(2, pl.cdiv(B, block_b))
    TB = min(block_b, max(128, _round_up(pl.cdiv(B, n_tiles), 128)))
    B_pad = _round_up(B, TB)
    grid = (B_pad // TB,)

    # --- Input / parameter prep (single fused XLA op each; weights are tiny) -
    x_t = jnp.concatenate([state.T, action.T], axis=0).astype(compute_dtype)  # (D, B)
    if B_pad != B:
        x_t = jnp.pad(x_t, ((0, 0), (0, B_pad - B)))

    w1_c = w1.astype(compute_dtype)                      # (H, D)
    w2_c = w2.astype(compute_dtype)                      # (H, H)
    w3_c = w3.reshape(1, H).astype(compute_dtype)        # (1, H)
    b1_c = b1.reshape(H, 1).astype(jnp.float32)          # lane-broadcast column
    b2_c = b2.reshape(H, 1).astype(jnp.float32)
    b3_c = b3.reshape(1, 1).astype(jnp.float32)          # SMEM scalar

    resident = lambda shape: pl.BlockSpec(shape, lambda i: (0,) * len(shape))

    out = pl.pallas_call(
        softq_kernel,
        out_shape=jax.ShapeDtypeStruct((1, B_pad), jnp.float32),
        grid=grid,
        in_specs=[
            pl.BlockSpec((D, TB), lambda i: (0, i)),            # x^T tile (pipelined)
            resident((H, D)),                                    # w1 (VMEM-resident)
            resident((H, 1)),                                    # b1
            resident((H, H)),                                    # w2
            resident((H, 1)),                                    # b2
            resident((1, H)),                                    # w3
            pl.BlockSpec(memory_space=pltpu.MemorySpace.SMEM),   # b3 scalar
        ],
        out_specs=pl.BlockSpec((1, TB), lambda i: (0, i)),       # lane-dense q row
        compiler_params=pltpu.CompilerParams(
            dimension_semantics=("parallel",)),                  # v7x: 2 TCs split batch
    )(x_t, w1_c, b1_c, w2_c, b2_c, w3_c, b3_c)

    # (1, B_pad) row of q values -> (B, 1) column, dropping batch padding.
    return out.reshape(B_pad, 1)[:B]


def init_params(key, num_inputs, num_actions, hidden_size, init_w=0.003):
    """Deterministic init mirroring nn.Linear defaults + the custom linear3 init.

    Weights are stored in PyTorch-native (out_features, in_features) shape.
    """
    D = num_inputs + num_actions
    k1, k2, k3, k4, k5, k6 = jax.random.split(key, 6)

    lim1 = 1.0 / jnp.sqrt(jnp.float32(D))
    w1 = jax.random.uniform(k1, (hidden_size, D), jnp.float32, -lim1, lim1)
    b1 = jax.random.uniform(k2, (hidden_size,), jnp.float32, -lim1, lim1)

    lim2 = 1.0 / jnp.sqrt(jnp.float32(hidden_size))
    w2 = jax.random.uniform(k3, (hidden_size, hidden_size), jnp.float32, -lim2, lim2)
    b2 = jax.random.uniform(k4, (hidden_size,), jnp.float32, -lim2, lim2)

    w3 = jax.random.uniform(k5, (1, hidden_size), jnp.float32, -init_w, init_w)
    b3 = jax.random.uniform(k6, (1,), jnp.float32, -init_w, init_w)
    return (w1, b1, w2, b2, w3, b3)


def softq_reference(state, action, params):
    """Pure-JAX reference of the PyTorch forward (concat version)."""
    w1, b1, w2, b2, w3, b3 = params
    x = jnp.concatenate([state, action], axis=1)
    x = jnp.maximum(x @ w1.T + b1, 0.0)
    x = jnp.maximum(x @ w2.T + b2, 0.0)
    return x @ w3.T + b3


if __name__ == "__main__":
    num_inputs, num_actions, hidden_size = 6, 2, 32

    key = jax.random.PRNGKey(0)
    kp, ks, ka = jax.random.split(key, 3)
    params = init_params(kp, num_inputs, num_actions, hidden_size)

    # Small-shape check (batch=2): single 128-lane tile.
    state = jax.random.normal(ks, (2, num_inputs), jnp.float32)
    action = jax.random.normal(ka, (2, num_actions), jnp.float32)
    ref = softq_reference(state, action, params)

    out_f32 = jax.block_until_ready(
        softq_forward(state, action, params, compute_dtype=jnp.float32))
    assert out_f32.shape == (2, 1), out_f32.shape
    assert jnp.allclose(out_f32, ref, atol=1e-4, rtol=1e-4), (out_f32, ref)

    out_bf16 = jax.block_until_ready(softq_forward(state, action, params))
    assert out_bf16.shape == (2, 1), out_bf16.shape
    assert jnp.allclose(out_bf16, ref, atol=1e-2, rtol=5e-2), (out_bf16, ref)

    # Larger batch exercises the multi-tile pipelined path (B=1000 -> 2 x 512).
    ks2, ka2 = jax.random.split(jax.random.PRNGKey(1), 2)
    state_l = jax.random.normal(ks2, (1000, num_inputs), jnp.float32)
    action_l = jax.random.normal(ka2, (1000, num_actions), jnp.float32)
    out_l = jax.block_until_ready(
        softq_forward(state_l, action_l, params, compute_dtype=jnp.float32))
    ref_l = softq_reference(state_l, action_l, params)
    assert out_l.shape == (1000, 1), out_l.shape
    assert jnp.allclose(out_l, ref_l, atol=1e-4, rtol=1e-4)

    print("KERNEL_OK")
</pallas_src>

<mosaic_0001>
module attributes {stable_mosaic.version = 11 : i64} {
  func.func @softq_kernel(%arg0: i32, %arg1: memref<8x128xf32, #tpu.memory_space<vmem>>, %arg2: memref<32x8xf32, #tpu.memory_space<vmem>>, %arg3: memref<32x1xf32, #tpu.memory_space<vmem>>, %arg4: memref<32x32xf32, #tpu.memory_space<vmem>>, %arg5: memref<32x1xf32, #tpu.memory_space<vmem>>, %arg6: memref<1x32xf32, #tpu.memory_space<vmem>>, %arg7: memref<1x1xf32, #tpu.memory_space<smem>>, %arg8: memref<1x128xf32, #tpu.memory_space<vmem>>) attributes {dimension_semantics = [#tpu.dimension_semantics<parallel>], iteration_bounds = array<i64: 1>, scalar_prefetch = 0 : i64, scratch_operands = 0 : i64, tpu.core_type = #tpu.core_type<tc>, window_params = [{transform_indices = @transform_0, window_bounds = array<i64: 8, 128>}, {pipeline_mode = #tpu.pipeline_mode<synchronous>, transform_indices = @transform_1, window_bounds = array<i64: 32, 8>}, {pipeline_mode = #tpu.pipeline_mode<synchronous>, transform_indices = @transform_2, window_bounds = array<i64: 32, 1>}, {pipeline_mode = #tpu.pipeline_mode<synchronous>, transform_indices = @transform_3, window_bounds = array<i64: 32, 32>}, {pipeline_mode = #tpu.pipeline_mode<synchronous>, transform_indices = @transform_4, window_bounds = array<i64: 32, 1>}, {pipeline_mode = #tpu.pipeline_mode<synchronous>, transform_indices = @transform_5, window_bounds = array<i64: 1, 32>}, {transform_indices = @transform_6, window_bounds = array<i64: 1, 1>}, {transform_indices = @transform_7, window_bounds = array<i64: 1, 128>}]} {
    %c0 = arith.constant 0 : index
    %c0_0 = arith.constant 0 : index
    %0 = vector.load %arg2[%c0, %c0_0] : memref<32x8xf32, #tpu.memory_space<vmem>>, vector<32x8xf32>
    %c0_1 = arith.constant 0 : index
    %c0_2 = arith.constant 0 : index
    %1 = vector.load %arg1[%c0_1, %c0_2] : memref<8x128xf32, #tpu.memory_space<vmem>>, vector<8x128xf32>
    %cst = arith.constant dense<0.000000e+00> : vector<32x128xf32>
    %2 = tpu.matmul %0, %1, %cst {dimension_numbers = #tpu.dot_dimension_numbers<[1], [0], [0], [1], [0, 0, 1, 1], [], []>} : vector<32x8xf32>, vector<8x128xf32>, vector<32x128xf32> -> vector<32x128xf32>
    %c0_3 = arith.constant 0 : index
    %c0_4 = arith.constant 0 : index
    %3 = vector.load %arg3[%c0_3, %c0_4] : memref<32x1xf32, #tpu.memory_space<vmem>>, vector<32x1xf32>
    %4 = vector.broadcast %3 : vector<32x1xf32> to vector<32x128xf32>
    %5 = arith.addf %2, %4 : vector<32x128xf32>
    %cst_5 = arith.constant 0.000000e+00 : f32
    %6 = vector.broadcast %cst_5 : f32 to vector<32x128xf32>
    %7 = arith.maximumf %5, %6 : vector<32x128xf32>
    %c0_6 = arith.constant 0 : index
    %c0_7 = arith.constant 0 : index
    %8 = vector.load %arg4[%c0_6, %c0_7] : memref<32x32xf32, #tpu.memory_space<vmem>>, vector<32x32xf32>
    %cst_8 = arith.constant dense<0.000000e+00> : vector<32x128xf32>
    %9 = tpu.matmul %8, %7, %cst_8 {dimension_numbers = #tpu.dot_dimension_numbers<[1], [0], [0], [1], [0, 0, 1, 1], [], []>} : vector<32x32xf32>, vector<32x128xf32>, vector<32x128xf32> -> vector<32x128xf32>
    %c0_9 = arith.constant 0 : index
    %c0_10 = arith.constant 0 : index
    %10 = vector.load %arg5[%c0_9, %c0_10] : memref<32x1xf32, #tpu.memory_space<vmem>>, vector<32x1xf32>
    %11 = vector.broadcast %10 : vector<32x1xf32> to vector<32x128xf32>
    %12 = arith.addf %9, %11 : vector<32x128xf32>
    %cst_11 = arith.constant 0.000000e+00 : f32
    %13 = vector.broadcast %cst_11 : f32 to vector<32x128xf32>
    %14 = arith.maximumf %12, %13 : vector<32x128xf32>
    %c0_12 = arith.constant 0 : index
    %c0_13 = arith.constant 0 : index
    %15 = vector.load %arg6[%c0_12, %c0_13] : memref<1x32xf32, #tpu.memory_space<vmem>>, vector<1x32xf32>
    %cst_14 = arith.constant dense<0.000000e+00> : vector<1x128xf32>
    %16 = tpu.matmul %15, %14, %cst_14 {dimension_numbers = #tpu.dot_dimension_numbers<[1], [0], [0], [1], [0, 0, 1, 1], [], []>} : vector<1x32xf32>, vector<32x128xf32>, vector<1x128xf32> -> vector<1x128xf32>
    %c0_15 = arith.constant 0 : index
    %c0_16 = arith.constant 0 : index
    %17 = memref.load %arg7[%c0_15, %c0_16] : memref<1x1xf32, #tpu.memory_space<smem>>
    %18 = vector.broadcast %17 : f32 to vector<1x128xf32>
    %19 = arith.addf %16, %18 : vector<1x128xf32>
    %c0_17 = arith.constant 0 : index
    %c0_18 = arith.constant 0 : index
    %20 = vector.load %arg8[%c0_17, %c0_18] : memref<1x128xf32, #tpu.memory_space<vmem>>, vector<1x128xf32>
    tpu.vector_store %arg8[%c0_17, %c0_18], %19 {strides = array<i32>} : memref<1x128xf32, #tpu.memory_space<vmem>>, vector<1x128xf32>,
    return
  }
  func.func @transform_0(%arg0: i32) -> (i32, i32) {
    %c0_i32 = arith.constant 0 : i32
    %c0_i32_0 = arith.constant 0 : i32
    return %c0_i32, %arg0 : i32, i32
  }
  func.func @transform_1(%arg0: i32) -> (i32, i32) {
    %c0_i32 = arith.constant 0 : i32
    %c0_i32_0 = arith.constant 0 : i32
    %c0_i32_1 = arith.constant 0 : i32
    return %c0_i32, %c0_i32_0 : i32, i32
  }
  func.func @transform_2(%arg0: i32) -> (i32, i32) {
    %c0_i32 = arith.constant 0 : i32
    %c0_i32_0 = arith.constant 0 : i32
    %c0_i32_1 = arith.constant 0 : i32
    return %c0_i32, %c0_i32_0 : i32, i32
  }
  func.func @transform_3(%arg0: i32) -> (i32, i32) {
    %c0_i32 = arith.constant 0 : i32
    %c0_i32_0 = arith.constant 0 : i32
    %c0_i32_1 = arith.constant 0 : i32
    return %c0_i32, %c0_i32_0 : i32, i32
  }
  func.func @transform_4(%arg0: i32) -> (i32, i32) {
    %c0_i32 = arith.constant 0 : i32
    %c0_i32_0 = arith.constant 0 : i32
    %c0_i32_1 = arith.constant 0 : i32
    return %c0_i32, %c0_i32_0 : i32, i32
  }
  func.func @transform_5(%arg0: i32) -> (i32, i32) {
    %c0_i32 = arith.constant 0 : i32
    %c0_i32_0 = arith.constant 0 : i32
    %c0_i32_1 = arith.constant 0 : i32
    return %c0_i32, %c0_i32_0 : i32, i32
  }
  func.func @transform_6(%arg0: i32) -> (i32, i32) {
    %c0_i32 = arith.constant 0 : i32
    %c0_i32_0 = arith.constant 0 : i32
    %c0_i32_1 = arith.constant 0 : i32
    return %c0_i32, %c0_i32_0 : i32, i32
  }
  func.func @transform_7(%arg0: i32) -> (i32, i32) {
    %c0_i32 = arith.constant 0 : i32
    %c0_i32_0 = arith.constant 0 : i32
    return %c0_i32, %arg0 : i32, i32
  }
}

</mosaic_0001>

<bundles_post_ra>
// kernel: tpu_custom_call.1
= control target key start
LH: loop header
LB: loop body
LE: loop exit
PB: predicated region body
PF: predicated region fallthrough
CT: control target
= control target key end

     0   :  { %vm57_vm0 = vcmask 64512   ;;  %v265_v5 = vmov 0   ;;  %s376_s0 = inlined_call_operand.vmem [shape: f32[8,128], index: 0, kind: input, shape index: {}]   ;;  %s377_s1 = inlined_call_operand.vmem [shape: f32[32,8], index: 1, kind: input, shape index: {}]   ;;  %s378_s2 = inlined_call_operand.vmem [shape: f32[32,1], index: 2, kind: input, shape index: {}]   ;;  %s379_s3 = inlined_call_operand.vmem [shape: f32[32,32], index: 3, kind: input, shape index: {}]   ;;  %s380_s4 = inlined_call_operand.vmem [shape: f32[32,1], index: 4, kind: input, shape index: {}]   ;;  %s381_s5 = inlined_call_operand.vmem [shape: f32[1,32], index: 5, kind: input, shape index: {}]   ;;  %s382_s6 = inlined_call_operand.<no memory space> [shape: f32[1,1], index: 6, kind: input, shape index: {}]   ;;  %s383_s7 = inlined_call_operand.hbm [shape: f32[1,128], index: 7, kind: output, shape index: {}]  }
   0x1   :  { %v32_v0 = vld [vmem:[%s376_s0] sm:$0xff]  ;;  %v31_v2 = vld [vmem:[%s377_s1 + $0x18] sm:$0xff]  ;;  %v34_v4 = vld [vmem:[%s378_s2 + $0x8] sm:$0xff]  ;;  %237 = vset.pattern.permute.xlu1 %v265_v5  ;;  %236 = vset.pattern.permute.xlu0 %v265_v5 }
   0x2   :  { %v28_v1 = vld [vmem:[%s377_s1] sm:$0xff]  ;;  %85 = vmatpush.msra.mxu0 %v32_v0  ;;  %229 = vmatpush.msra.mxu2 %v32_v0  ;;  %v36_v3 = vld [vmem:[%s378_s2 + $0x18] sm:$0xff] }
   0x3   :  { %220 = vmatmul.msk.f32.vlgmr.msra.gmra.mxu0 %vm57_vm0, %v28_v1  ;;  %223 = vmatmul.msk.f32.vlgmr.msra.gmra.mxu2 %vm57_vm0, %v31_v2 }
   0x4   :  { %13 = vsyncpa [#allocation4], 0  ;;  %54 = vperm.xlu0 %236, %v36_v3   ;;  %44 = vperm.xlu1 %237, %v34_v4   ;;  %v29_v6 = vld [vmem:[%s377_s1 + $0x8] sm:$0xff]  ;;  %v35_v7 = vld [vmem:[%s378_s2 + $0x10] sm:$0xff]  ;;  %vm131_vm1 = vcmask 261120   ;;  %v179_v51 = vstv %s382_s6  ;;  %s266_s0 = smov [#allocation3]  }
   0x5   :  { %238 = vset.pattern.permute.xlu2 %v265_v5  ;;  %v33_v8 = vld [vmem:[%s378_s2] sm:$0xff]  ;;  %v30_v9 = vld [vmem:[%s377_s1 + $0x10] sm:$0xff]  ;;  %v108_v10 = vld [vmem:[%s380_s4 + $0x8] sm:$0xff]  ;;  %s209_s11 = sshll.u32 %s266_s0, 4  ;;  %s211_s14 = sshll.u32 %s383_s7, 4  ;;  %s210_s11 = int_to_ptr.vmem [resolvable:$true] %s209_s11  ;;  %s212_s14 = int_to_ptr.hbm [resolvable:$true] %s211_s14 }
   0x6   :  { %v107_v11 = vld [vmem:[%s380_s4] sm:$0xff]  ;;  %v110_v13 = vld [vmem:[%s380_s4 + $0x18] sm:$0xff]  ;;  %v109_v19 = vld [vmem:[%s380_s4 + $0x10] sm:$0xff] }
   0x7   :  { %128 = vperm.xlu2 %238, %v110_v13   ;;  %v103_v30 = vld [vmem:[%s379_s3] sm:$0xff]  ;;  %v105_v31 = vld [vmem:[%s379_s3 + $0x10] sm:$0xff]  ;;  %v104_v32 = vld [vmem:[%s379_s3 + $0x8] sm:$0xff] }
   0x8   :  { %v106_v33 = vld [vmem:[%s379_s3 + $0x18] sm:$0xff]  ;;  %v177_v50 = vld [vmem:[%s381_s5] sm:$0x1] }
   0xb   :  { %221 = vmatmul.msk.f32.gmra.mxu0 %vm57_vm0, %v29_v6 }
   0xc   :  { %49 = vperm.xlu0 %236, %v35_v7   ;;  %39 = vperm.xlu1 %237, %v33_v8  }
   0xf   :  { %123 = vperm.xlu2 %238, %v109_v19  }
  0x13   :  { %222 = vmatmul.msk.f32.gmra.mxu0 %vm57_vm0, %v30_v9 }
  0x14   :  { %118 = vperm.xlu0 %236, %v108_v10   ;;  %113 = vperm.xlu1 %237, %v107_v11  }
  0x61   :  { %v129_v34 = vpop.permute.xlu2 %128 }
  0x69   :  { %v124_v37 = vpop.permute.xlu2 %123 }
  0x76   :  { %v55_v14 = vpop.permute.xlu0 %54  ;;  %v45_v15 = vpop.permute.xlu1 %44 }
  0x7e   :  { %v50_v21 = vpop.permute.xlu0 %49  ;;  %v40_v22 = vpop.permute.xlu1 %39 }
  0x80   :  { %v87_v12 = vpop.f32.mrf.mxu0 }
  0x81   :  { %v88_v26 = vadd.f32 %v87_v12, %v40_v22 }
  0x83   :  { %v99_v29 = vmax.f32 %v88_v26, 0.0 }
  0x86   :  { %v96_v16 = vpop.f32.mrf.mxu2  ;;  %v119_v42 = vpop.permute.xlu0 %118 }
  0x87   :  { %v97_v18 = vadd.f32 %v96_v16, %v55_v14  ;;  %v114_v45 = vpop.permute.xlu1 %113 }
  0x88   :  { %v90_v17 = vpop.f32.mrf.mxu0 }
  0x89   :  { %v102_v20 = vmax.f32 %v97_v18, 0.0  ;;  %v91_v24 = vadd.f32 %v90_v17, %v45_v15 }
  0x8b   :  { %156 = vmatpush.msra.mxu1 %v102_v20  ;;  %230 = vmatpush.msra.mxu3 %v102_v20  ;;  %v100_v28 = vmax.f32 %v91_v24, 0.0 }
  0x90   :  { %v93_v23 = vpop.f32.mrf.mxu0 }
  0x91   :  { %v94_v25 = vadd.f32 %v93_v23, %v50_v21 }
  0x93   :  { %v101_v27 = vmax.f32 %v94_v25, 0.0 }
  0x95   :  { %157 = vmatpush.msra.mxu1 %v101_v27  ;;  %231 = vmatpush.msra.mxu3 %v101_v27 }
  0x97   :  { %158 = vmatpush.msra.mxu1 %v100_v28  ;;  %232 = vmatpush.msra.mxu3 %v100_v28 }
  0x99   :  { %159 = vmatpush.msra.mxu1 %v99_v29  ;;  %233 = vmatpush.msra.mxu3 %v99_v29 }
  0x9a   :  { %224 = vmatmul.msk.f32.vlgmr.msra.gmra.mxu1 %vm131_vm1, %v103_v30  ;;  %226 = vmatmul.msk.f32.vlgmr.msra.gmra.mxu3 %vm131_vm1, %v105_v31 }
  0xa2   :  { %225 = vmatmul.msk.f32.gmra.mxu1 %vm131_vm1, %v104_v32  ;;  %227 = vmatmul.msk.f32.gmra.mxu3 %vm131_vm1, %v106_v33 }
 0x117   :  { %v161_v35 = vpop.f32.mrf.mxu1 }
 0x118   :  { %v162_v46 = vadd.f32 %v161_v35, %v114_v45 }
 0x11a   :  { %v173_v49 = vmax.f32 %v162_v46, 0.0 }
 0x11d   :  { %v167_v36 = vpop.f32.mrf.mxu3 }
 0x11e   :  { %v168_v40 = vadd.f32 %v167_v36, %v124_v37 }
 0x11f   :  { %v164_v38 = vpop.f32.mrf.mxu1 }
 0x120   :  { %v165_v43 = vadd.f32 %v164_v38, %v119_v42  ;;  %v175_v47 = vmax.f32 %v168_v40, 0.0 }
 0x122   :  { %v174_v48 = vmax.f32 %v165_v43, 0.0 }
 0x125   :  { %v170_v39 = vpop.f32.mrf.mxu3 }
 0x126   :  { %v171_v41 = vadd.f32 %v170_v39, %v129_v34 }
 0x128   :  { %v176_v44 = vmax.f32 %v171_v41, 0.0 }
 0x12a   :  { %195 = vmatpush.msrb.mxu2 %v176_v44 }
 0x12c   :  { %196 = vmatpush.msrb.mxu2 %v175_v47 }
 0x12e   :  { %197 = vmatpush.msrb.mxu2 %v174_v48 }
 0x130   :  { %198 = vmatpush.msrb.mxu2 %v173_v49 }
 0x131   :  { %228 = vmatmul.msk.f32.vlgmr.msrb.gmra.mxu2 %vm131_vm1, %v177_v50 }
 0x1b4   :  { %v200_v52 = vpop.f32.mrf.mxu2 }
 0x1b5   :  { %v201_v53 = vadd.f32 %v200_v52, %v179_v51 }
 0x1b7   :  { %203 = vst [vmem:[#allocation3] sm:$0x1] %v201_v53 }
 0x1b8   :  { %214 = dma.vmem_to_hbm [thread:$0]  %s210_s11, 16, %s212_s14, [#allocation4]  }
 0x1b9   :  { %263 = dma.done.wait [#allocation4], 16  }
 0x1ba   :  { %264 = vsyncadd [#allocation4], 4294967280 }
 0x1bb   :  { %219 = vsyncpa [#allocation4], 1 }

</bundles_post_ra>
